<compile_context>
chip_gen: v7x
topology: tpu7x:2x2x1
jax: 0.10.0
libtpu: 0.0.40
codegen_flags: <defaults>
</compile_context>

<pallas_src>
import functools

import jax
import jax.numpy as jnp
from jax import lax
from jax.experimental import pallas as pl
from jax.experimental.pallas import tpu as pltpu

EPS = 1e-5          # nn.BatchNorm1d default eps
LANE = 128

_VMEM = pl.BlockSpec(memory_space=pltpu.MemorySpace.VMEM)


def _round_up(n, m=LANE):
    return ((n + m - 1) // m) * m


# --------------------------------------------------------------------------
# Fused whole-network kernel
# --------------------------------------------------------------------------
def _fused_kernel(*refs, num_hidden, ksize, batch, length, eps):
    """refs = [x2d, (w_taps, bias, gamma, beta)*num_hidden, wf_taps, bf, out].

    x2d    : (B*L, Cin0)        channels-last, batch/length flattened
    w_taps : (K, Cin_pad, Cout_pad)  per-tap weight matrices (zero padded)
    bias/gamma/beta : (1, Cout_pad)  (zero on padded lanes)
    out    : (B, NP) lane-dense output (NP = n_outputs padded to 128)
    """
    n_in = 1 + 4 * num_hidden + 2
    x_ref = refs[0]
    prm = refs[1:n_in]
    o_ref = refs[n_in]

    pad = ksize // 2
    bl = batch * length

    # Position within the sequence for every flattened row; used to zero the
    # taps falling outside [0, L) (this also kills the cross-batch wrap that
    # the flattened roll would otherwise introduce).
    l_idx = lax.broadcasted_iota(jnp.int32, (bl, 1), 0) % length

    def conv(h2d, w_ref, b_ref):
        """Conv1d as K accumulated (B*L, Cin) x (Cin, Cout_pad) MXU dots."""
        acc = None
        for k in range(ksize):
            d = k - pad                         # tap offset along length
            if d == 0:
                tap = h2d
            else:
                # Shift rows by d via a sublane rotate (XLU slot, no copy),
                # then mask the |d| boundary rows of each sequence to zero.
                rolled = pltpu.roll(h2d, shift=(-d) % bl, axis=0)
                valid = jnp.logical_and(l_idx + d >= 0, l_idx + d < length)
                tap = jnp.where(valid, rolled, 0.0)
            contrib = jnp.dot(tap, w_ref[k],
                              preferred_element_type=jnp.float32)
            acc = contrib if acc is None else acc + contrib
        return acc + b_ref[...]                 # (B*L, Cout_pad) f32

    h = x_ref[...].astype(jnp.float32)          # (B*L, Cin0)
    inv_n = 1.0 / bl
    for li in range(num_hidden):
        w_ref, b_ref, g_ref, be_ref = prm[4 * li:4 * li + 4]
        acc = conv(h, w_ref, b_ref)
        acc = jnp.maximum(acc, 0.0)             # ReLU
        # BatchNorm1d (training mode): per-channel stats over B*L rows.
        # Single traversal of the in-register `acc` for both moments.
        s = jnp.sum(acc, axis=0, keepdims=True)
        ss = jnp.sum(acc * acc, axis=0, keepdims=True)
        mean = s * inv_n
        var = ss * inv_n - mean * mean          # biased variance
        scale = g_ref[...] * lax.rsqrt(var + eps)   # gamma folded (0 on pads)
        shift = be_ref[...] - mean * scale          # beta/mean folded
        h = acc * scale + shift                 # one elementwise pass

    wf_ref, bf_ref = prm[4 * num_hidden:4 * num_hidden + 2]
    y = conv(h, wf_ref, bf_ref)                 # (B*L, NP)
    y = y.reshape(batch, length, y.shape[-1])
    # Mean over the length axis -> lane-dense (B, NP) store.
    o_ref[...] = (jnp.sum(y, axis=1) * (1.0 / length)).astype(o_ref.dtype)


# --------------------------------------------------------------------------
# Wrapper
# --------------------------------------------------------------------------
def con1d_classifier_forward(x_ncl, params):
    """x_ncl: (B, in_channels, L) float32, matching PyTorch Conv1d input."""
    B, cin0, L = x_ncl.shape
    x2d = jnp.transpose(x_ncl, (0, 2, 1)).reshape(B * L, cin0)

    num_hidden = len(params["hidden"])
    ksize = params["final"][0].shape[-1]
    # TODO(synk): even kernel_size (PyTorch padding=K//2 -> Lout = L+1) would
    # need a different output-length handling; the roll-tap scheme assumes
    # a same-length conv (odd K).
    assert ksize % 2 == 1, "only odd kernel_size supported"

    def taps(w_oik, cin_pad, cout_pad):
        """(Cout, Cin, K) -> (K, Cin_pad, Cout_pad), zero-padded."""
        cout, cin, _ = w_oik.shape
        w = jnp.transpose(w_oik, (2, 1, 0)).astype(jnp.float32)   # (K,Cin,Cout)
        return jnp.pad(w, ((0, 0), (0, cin_pad - cin), (0, cout_pad - cout)))

    def vec(v, cpad):
        return jnp.pad(v.astype(jnp.float32), (0, cpad - v.shape[0])).reshape(1, cpad)

    args = [x2d]
    flops = 0
    trans = 0
    cin, cin_pad = cin0, cin0        # raw input channels stay unpadded
    for (w, b, g, beta) in params["hidden"]:
        cout = w.shape[0]
        cpad = _round_up(cout)
        args += [taps(w, cin_pad, cpad), vec(b, cpad), vec(g, cpad),
                 vec(beta, cpad)]
        flops += 2 * B * L * ksize * cin * cout
        trans += cpad                 # one rsqrt per (padded) channel
        cin, cin_pad = cout, cpad
    wf, bf = params["final"]
    n_out = wf.shape[0]
    npad = _round_up(n_out)
    args += [taps(wf, cin_pad, npad), vec(bf, npad)]
    flops += 2 * B * L * ksize * cin * n_out

    total_bytes = sum(int(a.size) * a.dtype.itemsize for a in args) + B * npad * 4

    out = pl.pallas_call(
        functools.partial(_fused_kernel, num_hidden=num_hidden, ksize=ksize,
                          batch=B, length=L, eps=EPS),
        out_shape=jax.ShapeDtypeStruct((B, npad), jnp.float32),
        in_specs=[_VMEM] * len(args),
        out_specs=_VMEM,
        compiler_params=pltpu.CompilerParams(
            vmem_limit_bytes=32 * 1024 * 1024),
        cost_estimate=pl.CostEstimate(flops=int(flops),
                                      transcendentals=int(trans),
                                      bytes_accessed=int(total_bytes)),
    )(*args)
    return out[:, :n_out]                       # (B, n_outputs)


# --------------------------------------------------------------------------
# Deterministic parameter init (PyTorch-like shapes: Conv1d weight (Cout,Cin,K))
# --------------------------------------------------------------------------
def init_params(key, num_layers, in_channels, num_kernels, kernel_size, n_outputs):
    params = {"hidden": [], "final": None}
    cin = in_channels
    for _ in range(num_layers):
        key, k1, k2 = jax.random.split(key, 3)
        bound = 1.0 / (cin * kernel_size) ** 0.5
        w = jax.random.uniform(k1, (num_kernels, cin, kernel_size), jnp.float32,
                               -bound, bound)
        b = jax.random.uniform(k2, (num_kernels,), jnp.float32, -bound, bound)
        gamma = jnp.ones((num_kernels,), jnp.float32)        # BN weight default
        beta = jnp.zeros((num_kernels,), jnp.float32)        # BN bias default
        params["hidden"].append((w, b, gamma, beta))
        cin = num_kernels
    key, k1, k2 = jax.random.split(key, 3)
    bound = 1.0 / (cin * kernel_size) ** 0.5
    w = jax.random.uniform(k1, (n_outputs, cin, kernel_size), jnp.float32,
                           -bound, bound)
    b = jax.random.uniform(k2, (n_outputs,), jnp.float32, -bound, bound)
    params["final"] = (w, b)
    return params


# --------------------------------------------------------------------------
# Pure-JAX reference (same semantics) for a correctness check
# --------------------------------------------------------------------------
def ref_forward(x_ncl, params):
    h = x_ncl
    for (w, b, gamma, beta) in params["hidden"]:
        pad = w.shape[-1] // 2
        y = lax.conv_general_dilated(h, w, (1,), [(pad, pad)],
                                     dimension_numbers=("NCH", "OIH", "NCH"),
                                     precision=lax.Precision.HIGHEST)
        y = y + b[None, :, None]
        y = jnp.maximum(y, 0.0)
        mean = y.mean(axis=(0, 2), keepdims=True)
        var = ((y - mean) ** 2).mean(axis=(0, 2), keepdims=True)
        h = (y - mean) / jnp.sqrt(var + EPS) * gamma[None, :, None] + beta[None, :, None]
    w, b = params["final"]
    pad = w.shape[-1] // 2
    y = lax.conv_general_dilated(h, w, (1,), [(pad, pad)],
                                 dimension_numbers=("NCH", "OIH", "NCH"),
                                 precision=lax.Precision.HIGHEST)
    y = y + b[None, :, None]
    return y.mean(axis=-1)


if __name__ == "__main__":
    num_layers, in_channels, num_kernels, kernel_size, n_outputs = 2, 4, 32, 3, 8
    B, L = 2, 16

    key = jax.random.PRNGKey(0)
    key, xk = jax.random.split(key)
    x = jax.random.normal(xk, (B, in_channels, L), jnp.float32)  # NCL like PyTorch
    params = init_params(key, num_layers, in_channels, num_kernels, kernel_size,
                         n_outputs)

    fwd = jax.jit(con1d_classifier_forward)
    out = jax.block_until_ready(fwd(x, params))
    ref = jax.block_until_ready(ref_forward(x, params))

    assert out.shape == (B, n_outputs), out.shape
    assert jnp.allclose(out, ref, atol=2e-3, rtol=2e-3), (out, ref)
    print("KERNEL_OK")
</pallas_src>

<mosaic_0001>
module attributes {stable_mosaic.version = 11 : i64} {
  func.func @_fused_kernel(%arg0: memref<32x4xf32, #tpu.memory_space<vmem>>, %arg1: memref<3x4x128xf32, #tpu.memory_space<vmem>>, %arg2: memref<1x128xf32, #tpu.memory_space<vmem>>, %arg3: memref<1x128xf32, #tpu.memory_space<vmem>>, %arg4: memref<1x128xf32, #tpu.memory_space<vmem>>, %arg5: memref<3x128x128xf32, #tpu.memory_space<vmem>>, %arg6: memref<1x128xf32, #tpu.memory_space<vmem>>, %arg7: memref<1x128xf32, #tpu.memory_space<vmem>>, %arg8: memref<1x128xf32, #tpu.memory_space<vmem>>, %arg9: memref<3x128x128xf32, #tpu.memory_space<vmem>>, %arg10: memref<1x128xf32, #tpu.memory_space<vmem>>, %arg11: memref<2x128xf32, #tpu.memory_space<vmem>>) attributes {dimension_semantics = [], scalar_prefetch = 0 : i64, scratch_operands = 0 : i64, tpu.core_type = #tpu.core_type<tc>} {
    %0 = tpu.iota {dimensions = array<i32: 0>} : vector<32x1xi32>
    %c16_i32 = arith.constant 16 : i32
    %c0_i32 = arith.constant 0 : i32
    %1 = arith.cmpi eq, %c16_i32, %c0_i32 : i32
    %c1_i32 = arith.constant 1 : i32
    %2 = arith.select %1, %c1_i32, %c16_i32 : i32
    %3 = vector.broadcast %2 : i32 to vector<32x1xi32>
    %4 = arith.remsi %0, %3 : vector<32x1xi32>
    %c0_i32_0 = arith.constant 0 : i32
    %5 = vector.broadcast %c0_i32_0 : i32 to vector<32x1xi32>
    %6 = arith.cmpi ne, %4, %5 : vector<32x1xi32>
    %c0_i32_1 = arith.constant 0 : i32
    %7 = vector.broadcast %c0_i32_1 : i32 to vector<32x1xi32>
    %8 = arith.cmpi slt, %4, %7 : vector<32x1xi32>
    %c0_i32_2 = arith.constant 0 : i32
    %9 = arith.cmpi slt, %2, %c0_i32_2 : i32
    %10 = vector.broadcast %9 : i1 to vector<32x1xi1>
    %11 = vector.broadcast %10 : vector<32x1xi1> to vector<32x1xi1>
    %12 = arith.xori %8, %11 : vector<32x1xi1>
    %13 = arith.andi %12, %6 : vector<32x1xi1>
    %14 = vector.broadcast %2 : i32 to vector<32x1xi32>
    %15 = arith.addi %4, %14 : vector<32x1xi32>
    %16 = arith.select %13, %15, %4 : vector<32x1xi1>, vector<32x1xi32>
    %c0 = arith.constant 0 : index
    %c0_3 = arith.constant 0 : index
    %17 = vector.load %arg0[%c0, %c0_3] : memref<32x4xf32, #tpu.memory_space<vmem>>, vector<32x4xf32>
    %c1_i32_4 = arith.constant 1 : i32
    %18 = tpu.dynamic_rotate %17 by %c1_i32_4 dim 0 : vector<32x4xf32>, i32 -> vector<32x4xf32>
    %c-1_i32 = arith.constant -1 : i32
    %19 = vector.broadcast %c-1_i32 : i32 to vector<32x1xi32>
    %20 = arith.addi %16, %19 : vector<32x1xi32>
    %c0_i32_5 = arith.constant 0 : i32
    %21 = vector.broadcast %c0_i32_5 : i32 to vector<32x1xi32>
    %22 = arith.cmpi sge, %20, %21 : vector<32x1xi32>
    %c-1_i32_6 = arith.constant -1 : i32
    %23 = vector.broadcast %c-1_i32_6 : i32 to vector<32x1xi32>
    %24 = arith.addi %16, %23 : vector<32x1xi32>
    %c16_i32_7 = arith.constant 16 : i32
    %25 = vector.broadcast %c16_i32_7 : i32 to vector<32x1xi32>
    %26 = arith.cmpi slt, %24, %25 : vector<32x1xi32>
    %27 = arith.andi %22, %26 : vector<32x1xi1>
    %cst = arith.constant 0.000000e+00 : f32
    %28 = vector.shape_cast %27 : vector<32x1xi1> to vector<32x1xi1>
    %29 = vector.broadcast %28 : vector<32x1xi1> to vector<32x4xi1>
    %30 = vector.broadcast %cst : f32 to vector<32x4xf32>
    %31 = arith.select %29, %18, %30 : vector<32x4xi1>, vector<32x4xf32>
    %c0_8 = arith.constant 0 : index
    %c0_9 = arith.constant 0 : index
    %c0_10 = arith.constant 0 : index
    %32 = vector.load %arg1[%c0_8, %c0_9, %c0_10] : memref<3x4x128xf32, #tpu.memory_space<vmem>>, vector<1x4x128xf32>
    %33 = vector.shape_cast %32 : vector<1x4x128xf32> to vector<4x128xf32>
    %cst_11 = arith.constant dense<0.000000e+00> : vector<32x128xf32>
    %34 = tpu.matmul %31, %33, %cst_11 {dimension_numbers = #tpu.dot_dimension_numbers<[1], [0], [0], [1], [0, 0, 1, 1], [], []>} : vector<32x4xf32>, vector<4x128xf32>, vector<32x128xf32> -> vector<32x128xf32>
    %c1 = arith.constant 1 : index
    %c0_12 = arith.constant 0 : index
    %c0_13 = arith.constant 0 : index
    %35 = vector.load %arg1[%c1, %c0_12, %c0_13] : memref<3x4x128xf32, #tpu.memory_space<vmem>>, vector<1x4x128xf32>
    %36 = vector.shape_cast %35 : vector<1x4x128xf32> to vector<4x128xf32>
    %cst_14 = arith.constant dense<0.000000e+00> : vector<32x128xf32>
    %37 = tpu.matmul %17, %36, %cst_14 {dimension_numbers = #tpu.dot_dimension_numbers<[1], [0], [0], [1], [0, 0, 1, 1], [], []>} : vector<32x4xf32>, vector<4x128xf32>, vector<32x128xf32> -> vector<32x128xf32>
    %38 = arith.addf %34, %37 : vector<32x128xf32>
    %c31_i32 = arith.constant 31 : i32
    %39 = tpu.dynamic_rotate %17 by %c31_i32 dim 0 : vector<32x4xf32>, i32 -> vector<32x4xf32>
    %c1_i32_15 = arith.constant 1 : i32
    %40 = vector.broadcast %c1_i32_15 : i32 to vector<32x1xi32>
    %41 = arith.addi %16, %40 : vector<32x1xi32>
    %c0_i32_16 = arith.constant 0 : i32
    %42 = vector.broadcast %c0_i32_16 : i32 to vector<32x1xi32>
    %43 = arith.cmpi sge, %41, %42 : vector<32x1xi32>
    %c1_i32_17 = arith.constant 1 : i32
    %44 = vector.broadcast %c1_i32_17 : i32 to vector<32x1xi32>
    %45 = arith.addi %16, %44 : vector<32x1xi32>
    %c16_i32_18 = arith.constant 16 : i32
    %46 = vector.broadcast %c16_i32_18 : i32 to vector<32x1xi32>
    %47 = arith.cmpi slt, %45, %46 : vector<32x1xi32>
    %48 = arith.andi %43, %47 : vector<32x1xi1>
    %cst_19 = arith.constant 0.000000e+00 : f32
    %49 = vector.shape_cast %48 : vector<32x1xi1> to vector<32x1xi1>
    %50 = vector.broadcast %49 : vector<32x1xi1> to vector<32x4xi1>
    %51 = vector.broadcast %cst_19 : f32 to vector<32x4xf32>
    %52 = arith.select %50, %39, %51 : vector<32x4xi1>, vector<32x4xf32>
    %c2 = arith.constant 2 : index
    %c0_20 = arith.constant 0 : index
    %c0_21 = arith.constant 0 : index
    %53 = vector.load %arg1[%c2, %c0_20, %c0_21] : memref<3x4x128xf32, #tpu.memory_space<vmem>>, vector<1x4x128xf32>
    %54 = vector.shape_cast %53 : vector<1x4x128xf32> to vector<4x128xf32>
    %cst_22 = arith.constant dense<0.000000e+00> : vector<32x128xf32>
    %55 = tpu.matmul %52, %54, %cst_22 {dimension_numbers = #tpu.dot_dimension_numbers<[1], [0], [0], [1], [0, 0, 1, 1], [], []>} : vector<32x4xf32>, vector<4x128xf32>, vector<32x128xf32> -> vector<32x128xf32>
    %56 = arith.addf %38, %55 : vector<32x128xf32>
    %c0_23 = arith.constant 0 : index
    %c0_24 = arith.constant 0 : index
    %57 = vector.load %arg2[%c0_23, %c0_24] : memref<1x128xf32, #tpu.memory_space<vmem>>, vector<1x128xf32>
    %58 = vector.broadcast %57 : vector<1x128xf32> to vector<32x128xf32>
    %59 = arith.addf %56, %58 : vector<32x128xf32>
    %cst_25 = arith.constant 0.000000e+00 : f32
    %60 = vector.broadcast %cst_25 : f32 to vector<32x128xf32>
    %61 = arith.maximumf %59, %60 : vector<32x128xf32>
    %cst_26 = arith.constant dense<0.000000e+00> : vector<128xf32>
    %62 = vector.multi_reduction <add>, %61, %cst_26 [0] : vector<32x128xf32> to vector<128xf32>
    %63 = vector.shape_cast %62 : vector<128xf32> to vector<1x128xf32>
    %64 = arith.mulf %61, %61 : vector<32x128xf32>
    %cst_27 = arith.constant dense<0.000000e+00> : vector<128xf32>
    %65 = vector.multi_reduction <add>, %64, %cst_27 [0] : vector<32x128xf32> to vector<128xf32>
    %66 = vector.shape_cast %65 : vector<128xf32> to vector<1x128xf32>
    %cst_28 = arith.constant 3.125000e-02 : f32
    %67 = vector.broadcast %cst_28 : f32 to vector<1x128xf32>
    %68 = arith.mulf %63, %67 : vector<1x128xf32>
    %cst_29 = arith.constant 3.125000e-02 : f32
    %69 = vector.broadcast %cst_29 : f32 to vector<1x128xf32>
    %70 = arith.mulf %66, %69 : vector<1x128xf32>
    %71 = arith.mulf %68, %68 : vector<1x128xf32>
    %72 = arith.subf %70, %71 : vector<1x128xf32>
    %c0_30 = arith.constant 0 : index
    %c0_31 = arith.constant 0 : index
    %73 = vector.load %arg3[%c0_30, %c0_31] : memref<1x128xf32, #tpu.memory_space<vmem>>, vector<1x128xf32>
    %cst_32 = arith.constant 9.99999974E-6 : f32
    %74 = vector.broadcast %cst_32 : f32 to vector<1x128xf32>
    %75 = arith.addf %72, %74 : vector<1x128xf32>
    %76 = math.rsqrt %75 : vector<1x128xf32>
    %77 = arith.mulf %73, %76 : vector<1x128xf32>
    %c0_33 = arith.constant 0 : index
    %c0_34 = arith.constant 0 : index
    %78 = vector.load %arg4[%c0_33, %c0_34] : memref<1x128xf32, #tpu.memory_space<vmem>>, vector<1x128xf32>
    %79 = arith.mulf %68, %77 : vector<1x128xf32>
    %80 = arith.subf %78, %79 : vector<1x128xf32>
    %81 = vector.broadcast %77 : vector<1x128xf32> to vector<32x128xf32>
    %82 = arith.mulf %61, %81 : vector<32x128xf32>
    %83 = vector.broadcast %80 : vector<1x128xf32> to vector<32x128xf32>
    %84 = arith.addf %82, %83 : vector<32x128xf32>
    %c1_i32_35 = arith.constant 1 : i32
    %85 = tpu.dynamic_rotate %84 by %c1_i32_35 dim 0 : vector<32x128xf32>, i32 -> vector<32x128xf32>
    %c-1_i32_36 = arith.constant -1 : i32
    %86 = vector.broadcast %c-1_i32_36 : i32 to vector<32x1xi32>
    %87 = arith.addi %16, %86 : vector<32x1xi32>
    %c0_i32_37 = arith.constant 0 : i32
    %88 = vector.broadcast %c0_i32_37 : i32 to vector<32x1xi32>
    %89 = arith.cmpi sge, %87, %88 : vector<32x1xi32>
    %c-1_i32_38 = arith.constant -1 : i32
    %90 = vector.broadcast %c-1_i32_38 : i32 to vector<32x1xi32>
    %91 = arith.addi %16, %90 : vector<32x1xi32>
    %c16_i32_39 = arith.constant 16 : i32
    %92 = vector.broadcast %c16_i32_39 : i32 to vector<32x1xi32>
    %93 = arith.cmpi slt, %91, %92 : vector<32x1xi32>
    %94 = arith.andi %89, %93 : vector<32x1xi1>
    %cst_40 = arith.constant 0.000000e+00 : f32
    %95 = vector.shape_cast %94 : vector<32x1xi1> to vector<32x1xi1>
    %96 = vector.broadcast %95 : vector<32x1xi1> to vector<32x128xi1>
    %97 = vector.broadcast %cst_40 : f32 to vector<32x128xf32>
    %98 = arith.select %96, %85, %97 : vector<32x128xi1>, vector<32x128xf32>
    %c0_41 = arith.constant 0 : index
    %c0_42 = arith.constant 0 : index
    %c0_43 = arith.constant 0 : index
    %99 = vector.load %arg5[%c0_41, %c0_42, %c0_43] : memref<3x128x128xf32, #tpu.memory_space<vmem>>, vector<1x128x128xf32>
    %100 = vector.shape_cast %99 : vector<1x128x128xf32> to vector<128x128xf32>
    %cst_44 = arith.constant dense<0.000000e+00> : vector<32x128xf32>
    %101 = tpu.matmul %98, %100, %cst_44 {dimension_numbers = #tpu.dot_dimension_numbers<[1], [0], [0], [1], [0, 0, 1, 1], [], []>} : vector<32x128xf32>, vector<128x128xf32>, vector<32x128xf32> -> vector<32x128xf32>
    %c1_45 = arith.constant 1 : index
    %c0_46 = arith.constant 0 : index
    %c0_47 = arith.constant 0 : index
    %102 = vector.load %arg5[%c1_45, %c0_46, %c0_47] : memref<3x128x128xf32, #tpu.memory_space<vmem>>, vector<1x128x128xf32>
    %103 = vector.shape_cast %102 : vector<1x128x128xf32> to vector<128x128xf32>
    %cst_48 = arith.constant dense<0.000000e+00> : vector<32x128xf32>
    %104 = tpu.matmul %84, %103, %cst_48 {dimension_numbers = #tpu.dot_dimension_numbers<[1], [0], [0], [1], [0, 0, 1, 1], [], []>} : vector<32x128xf32>, vector<128x128xf32>, vector<32x128xf32> -> vector<32x128xf32>
    %105 = arith.addf %101, %104 : vector<32x128xf32>
    %c31_i32_49 = arith.constant 31 : i32
    %106 = tpu.dynamic_rotate %84 by %c31_i32_49 dim 0 : vector<32x128xf32>, i32 -> vector<32x128xf32>
    %c1_i32_50 = arith.constant 1 : i32
    %107 = vector.broadcast %c1_i32_50 : i32 to vector<32x1xi32>
    %108 = arith.addi %16, %107 : vector<32x1xi32>
    %c0_i32_51 = arith.constant 0 : i32
    %109 = vector.broadcast %c0_i32_51 : i32 to vector<32x1xi32>
    %110 = arith.cmpi sge, %108, %109 : vector<32x1xi32>
    %c1_i32_52 = arith.constant 1 : i32
    %111 = vector.broadcast %c1_i32_52 : i32 to vector<32x1xi32>
    %112 = arith.addi %16, %111 : vector<32x1xi32>
    %c16_i32_53 = arith.constant 16 : i32
    %113 = vector.broadcast %c16_i32_53 : i32 to vector<32x1xi32>
    %114 = arith.cmpi slt, %112, %113 : vector<32x1xi32>
    %115 = arith.andi %110, %114 : vector<32x1xi1>
    %cst_54 = arith.constant 0.000000e+00 : f32
    %116 = vector.shape_cast %115 : vector<32x1xi1> to vector<32x1xi1>
    %117 = vector.broadcast %116 : vector<32x1xi1> to vector<32x128xi1>
    %118 = vector.broadcast %cst_54 : f32 to vector<32x128xf32>
    %119 = arith.select %117, %106, %118 : vector<32x128xi1>, vector<32x128xf32>
    %c2_55 = arith.constant 2 : index
    %c0_56 = arith.constant 0 : index
    %c0_57 = arith.constant 0 : index
    %120 = vector.load %arg5[%c2_55, %c0_56, %c0_57] : memref<3x128x128xf32, #tpu.memory_space<vmem>>, vector<1x128x128xf32>
    %121 = vector.shape_cast %120 : vector<1x128x128xf32> to vector<128x128xf32>
    %cst_58 = arith.constant dense<0.000000e+00> : vector<32x128xf32>
    %122 = tpu.matmul %119, %121, %cst_58 {dimension_numbers = #tpu.dot_dimension_numbers<[1], [0], [0], [1], [0, 0, 1, 1], [], []>} : vector<32x128xf32>, vector<128x128xf32>, vector<32x128xf32> -> vector<32x128xf32>
    %123 = arith.addf %105, %122 : vector<32x128xf32>
    %c0_59 = arith.constant 0 : index
    %c0_60 = arith.constant 0 : index
    %124 = vector.load %arg6[%c0_59, %c0_60] : memref<1x128xf32, #tpu.memory_space<vmem>>, vector<1x128xf32>
    %125 = vector.broadcast %124 : vector<1x128xf32> to vector<32x128xf32>
    %126 = arith.addf %123, %125 : vector<32x128xf32>
    %cst_61 = arith.constant 0.000000e+00 : f32
    %127 = vector.broadcast %cst_61 : f32 to vector<32x128xf32>
    %128 = arith.maximumf %126, %127 : vector<32x128xf32>
    %cst_62 = arith.constant dense<0.000000e+00> : vector<128xf32>
    %129 = vector.multi_reduction <add>, %128, %cst_62 [0] : vector<32x128xf32> to vector<128xf32>
    %130 = vector.shape_cast %129 : vector<128xf32> to vector<1x128xf32>
    %131 = arith.mulf %128, %128 : vector<32x128xf32>
    %cst_63 = arith.constant dense<0.000000e+00> : vector<128xf32>
    %132 = vector.multi_reduction <add>, %131, %cst_63 [0] : vector<32x128xf32> to vector<128xf32>
    %133 = vector.shape_cast %132 : vector<128xf32> to vector<1x128xf32>
    %cst_64 = arith.constant 3.125000e-02 : f32
    %134 = vector.broadcast %cst_64 : f32 to vector<1x128xf32>
    %135 = arith.mulf %130, %134 : vector<1x128xf32>
    %cst_65 = arith.constant 3.125000e-02 : f32
    %136 = vector.broadcast %cst_65 : f32 to vector<1x128xf32>
    %137 = arith.mulf %133, %136 : vector<1x128xf32>
    %138 = arith.mulf %135, %135 : vector<1x128xf32>
    %139 = arith.subf %137, %138 : vector<1x128xf32>
    %c0_66 = arith.constant 0 : index
    %c0_67 = arith.constant 0 : index
    %140 = vector.load %arg7[%c0_66, %c0_67] : memref<1x128xf32, #tpu.memory_space<vmem>>, vector<1x128xf32>
    %cst_68 = arith.constant 9.99999974E-6 : f32
    %141 = vector.broadcast %cst_68 : f32 to vector<1x128xf32>
    %142 = arith.addf %139, %141 : vector<1x128xf32>
    %143 = math.rsqrt %142 : vector<1x128xf32>
    %144 = arith.mulf %140, %143 : vector<1x128xf32>
    %c0_69 = arith.constant 0 : index
    %c0_70 = arith.constant 0 : index
    %145 = vector.load %arg8[%c0_69, %c0_70] : memref<1x128xf32, #tpu.memory_space<vmem>>, vector<1x128xf32>
    %146 = arith.mulf %135, %144 : vector<1x128xf32>
    %147 = arith.subf %145, %146 : vector<1x128xf32>
    %148 = vector.broadcast %144 : vector<1x128xf32> to vector<32x128xf32>
    %149 = arith.mulf %128, %148 : vector<32x128xf32>
    %150 = vector.broadcast %147 : vector<1x128xf32> to vector<32x128xf32>
    %151 = arith.addf %149, %150 : vector<32x128xf32>
    %c1_i32_71 = arith.constant 1 : i32
    %152 = tpu.dynamic_rotate %151 by %c1_i32_71 dim 0 : vector<32x128xf32>, i32 -> vector<32x128xf32>
    %c-1_i32_72 = arith.constant -1 : i32
    %153 = vector.broadcast %c-1_i32_72 : i32 to vector<32x1xi32>
    %154 = arith.addi %16, %153 : vector<32x1xi32>
    %c0_i32_73 = arith.constant 0 : i32
    %155 = vector.broadcast %c0_i32_73 : i32 to vector<32x1xi32>
    %156 = arith.cmpi sge, %154, %155 : vector<32x1xi32>
    %c-1_i32_74 = arith.constant -1 : i32
    %157 = vector.broadcast %c-1_i32_74 : i32 to vector<32x1xi32>
    %158 = arith.addi %16, %157 : vector<32x1xi32>
    %c16_i32_75 = arith.constant 16 : i32
    %159 = vector.broadcast %c16_i32_75 : i32 to vector<32x1xi32>
    %160 = arith.cmpi slt, %158, %159 : vector<32x1xi32>
    %161 = arith.andi %156, %160 : vector<32x1xi1>
    %cst_76 = arith.constant 0.000000e+00 : f32
    %162 = vector.shape_cast %161 : vector<32x1xi1> to vector<32x1xi1>
    %163 = vector.broadcast %162 : vector<32x1xi1> to vector<32x128xi1>
    %164 = vector.broadcast %cst_76 : f32 to vector<32x128xf32>
    %165 = arith.select %163, %152, %164 : vector<32x128xi1>, vector<32x128xf32>
    %c0_77 = arith.constant 0 : index
    %c0_78 = arith.constant 0 : index
    %c0_79 = arith.constant 0 : index
    %166 = vector.load %arg9[%c0_77, %c0_78, %c0_79] : memref<3x128x128xf32, #tpu.memory_space<vmem>>, vector<1x128x128xf32>
    %167 = vector.shape_cast %166 : vector<1x128x128xf32> to vector<128x128xf32>
    %cst_80 = arith.constant dense<0.000000e+00> : vector<32x128xf32>
    %168 = tpu.matmul %165, %167, %cst_80 {dimension_numbers = #tpu.dot_dimension_numbers<[1], [0], [0], [1], [0, 0, 1, 1], [], []>} : vector<32x128xf32>, vector<128x128xf32>, vector<32x128xf32> -> vector<32x128xf32>
    %c1_81 = arith.constant 1 : index
    %c0_82 = arith.constant 0 : index
    %c0_83 = arith.constant 0 : index
    %169 = vector.load %arg9[%c1_81, %c0_82, %c0_83] : memref<3x128x128xf32, #tpu.memory_space<vmem>>, vector<1x128x128xf32>
    %170 = vector.shape_cast %169 : vector<1x128x128xf32> to vector<128x128xf32>
    %cst_84 = arith.constant dense<0.000000e+00> : vector<32x128xf32>
    %171 = tpu.matmul %151, %170, %cst_84 {dimension_numbers = #tpu.dot_dimension_numbers<[1], [0], [0], [1], [0, 0, 1, 1], [], []>} : vector<32x128xf32>, vector<128x128xf32>, vector<32x128xf32> -> vector<32x128xf32>
    %172 = arith.addf %168, %171 : vector<32x128xf32>
    %c31_i32_85 = arith.constant 31 : i32
    %173 = tpu.dynamic_rotate %151 by %c31_i32_85 dim 0 : vector<32x128xf32>, i32 -> vector<32x128xf32>
    %c1_i32_86 = arith.constant 1 : i32
    %174 = vector.broadcast %c1_i32_86 : i32 to vector<32x1xi32>
    %175 = arith.addi %16, %174 : vector<32x1xi32>
    %c0_i32_87 = arith.constant 0 : i32
    %176 = vector.broadcast %c0_i32_87 : i32 to vector<32x1xi32>
    %177 = arith.cmpi sge, %175, %176 : vector<32x1xi32>
    %c1_i32_88 = arith.constant 1 : i32
    %178 = vector.broadcast %c1_i32_88 : i32 to vector<32x1xi32>
    %179 = arith.addi %16, %178 : vector<32x1xi32>
    %c16_i32_89 = arith.constant 16 : i32
    %180 = vector.broadcast %c16_i32_89 : i32 to vector<32x1xi32>
    %181 = arith.cmpi slt, %179, %180 : vector<32x1xi32>
    %182 = arith.andi %177, %181 : vector<32x1xi1>
    %cst_90 = arith.constant 0.000000e+00 : f32
    %183 = vector.shape_cast %182 : vector<32x1xi1> to vector<32x1xi1>
    %184 = vector.broadcast %183 : vector<32x1xi1> to vector<32x128xi1>
    %185 = vector.broadcast %cst_90 : f32 to vector<32x128xf32>
    %186 = arith.select %184, %173, %185 : vector<32x128xi1>, vector<32x128xf32>
    %c2_91 = arith.constant 2 : index
    %c0_92 = arith.constant 0 : index
    %c0_93 = arith.constant 0 : index
    %187 = vector.load %arg9[%c2_91, %c0_92, %c0_93] : memref<3x128x128xf32, #tpu.memory_space<vmem>>, vector<1x128x128xf32>
    %188 = vector.shape_cast %187 : vector<1x128x128xf32> to vector<128x128xf32>
    %cst_94 = arith.constant dense<0.000000e+00> : vector<32x128xf32>
    %189 = tpu.matmul %186, %188, %cst_94 {dimension_numbers = #tpu.dot_dimension_numbers<[1], [0], [0], [1], [0, 0, 1, 1], [], []>} : vector<32x128xf32>, vector<128x128xf32>, vector<32x128xf32> -> vector<32x128xf32>
    %190 = arith.addf %172, %189 : vector<32x128xf32>
    %c0_95 = arith.constant 0 : index
    %c0_96 = arith.constant 0 : index
    %191 = vector.load %arg10[%c0_95, %c0_96] : memref<1x128xf32, #tpu.memory_space<vmem>>, vector<1x128xf32>
    %192 = vector.broadcast %191 : vector<1x128xf32> to vector<32x128xf32>
    %193 = arith.addf %190, %192 : vector<32x128xf32>
    %194 = vector.shape_cast %193 : vector<32x128xf32> to vector<2x16x128xf32>
    %cst_97 = arith.constant dense<0.000000e+00> : vector<2x128xf32>
    %195 = vector.multi_reduction <add>, %194, %cst_97 [1] : vector<2x16x128xf32> to vector<2x128xf32>
    %cst_98 = arith.constant 6.250000e-02 : f32
    %196 = vector.broadcast %cst_98 : f32 to vector<2x128xf32>
    %197 = arith.mulf %195, %196 : vector<2x128xf32>
    %c0_99 = arith.constant 0 : index
    %c0_100 = arith.constant 0 : index
    %198 = vector.load %arg11[%c0_99, %c0_100] : memref<2x128xf32, #tpu.memory_space<vmem>>, vector<2x128xf32>
    tpu.vector_store %arg11[%c0_99, %c0_100], %197 {strides = array<i32>} : memref<2x128xf32, #tpu.memory_space<vmem>>, vector<2x128xf32>,
    return
  }
}

</mosaic_0001>

<bundles_post_ra>
// kernel: con1d_classifier_forward.1
= control target key start
LH: loop header
LB: loop body
LE: loop exit
PB: predicated region body
PF: predicated region fallthrough
CT: control target
= control target key end

     0   :  { %vm149_vm0 = vcmask 1043456   ;;  %v39_v1 = vlaneseq  ;;  %vm136_vm1 = vcmask 31744   ;;  %s2600_s0 = inlined_call_operand.vmem [shape: f32[32,4], index: 0, kind: input, shape index: {}]   ;;  %s2601_s1 = inlined_call_operand.vmem [shape: f32[3,4,128], index: 1, kind: input, shape index: {}]   ;;  %s2602_s2 = inlined_call_operand.vmem [shape: f32[1,128], index: 2, kind: input, shape index: {}]   ;;  %s2603_s3 = inlined_call_operand.vmem [shape: f32[1,128], index: 3, kind: input, shape index: {}]   ;;  %s2604_s4 = inlined_call_operand.vmem [shape: f32[1,128], index: 4, kind: input, shape index: {}]   ;;  %s2605_s5 = inlined_call_operand.vmem [shape: f32[3,128,128], index: 5, kind: input, shape index: {}]   ;;  %s2606_s6 = inlined_call_operand.vmem [shape: f32[1,128], index: 6, kind: input, shape index: {}]   ;;  %s2607_s7 = inlined_call_operand.vmem [shape: f32[1,128], index: 7, kind: input, shape index: {}]   ;;  %s2608_s8 = inlined_call_operand.vmem [shape: f32[1,128], index: 8, kind: input, shape index: {}]   ;;  %s2609_s9 = inlined_call_operand.vmem [shape: f32[3,128,128], index: 9, kind: input, shape index: {}]   ;;  %s2610_s10 = inlined_call_operand.vmem [shape: f32[1,128], index: 10, kind: input, shape index: {}]   ;;  %s2611_s11 = inlined_call_operand.hbm [shape: f32[2,128], index: 11, kind: output, shape index: {}]  }
   0x1   :  { %v133_v0 = vld [vmem:[%s2601_s1] sm:$0xf]  ;;  %v95_v3 = vld [vmem:[%s2600_s0 + $0x18] sm:$0xff]  ;;  %v1341_v4 = vld [vmem:[%s2601_s1 + $0x8] sm:$0xf] }
   0x2   :  { %v92_v2 = vld [vmem:[%s2600_s0] sm:$0xff]  ;;  %1565 = vmatprep.subr.msk.mxu0 %vm149_vm0, %v133_v0  ;;  %v93_v5 = vld [vmem:[%s2600_s0 + $0x8] sm:$0xff]  ;;  %v94_v6 = vld [vmem:[%s2600_s0 + $0x10] sm:$0xff]  ;;  %v2136_v7 = vshrl.u32 %v39_v1, 7  ;;  %v99_v9 = vrot.slane %v95_v3, 7 }
   0x3   :  { %1559 = vmatprep.mubr.msk.f32.mxu1 %vm136_vm1, %v92_v2  ;;  %1566 = vmatpush3.msk.msra.mxu0 %vm149_vm0, %v133_v0  ;;  %v96_v8 = vrot.slane %v92_v2, 7  ;;  %v1330_v10 = vld [vmem:[%s2601_s1 + $0x4] sm:$0xf]  ;;  %v97_v11 = vrot.slane %v93_v5, 7 }
   0x4   :  { %1573 = vmatprep.subr.msk.mxu0 %vm149_vm0, %v1341_v4  ;;  %1557 = vmatprep.subr.msk.mxu1 %vm149_vm0, %v1330_v10 }
   0x5   :  { %16 = vsyncpa [#allocation3], 0  ;;  %v48_v12 = vand.u32 15, %v2136_v7  ;;  %vm100_vm2 = vcmp.lt.s32.totalorder %v2136_v7, 1  ;;  %v42_v13 = vadd.s32 16, %v2136_v7  ;;  %v98_v14 = vrot.slane %v94_v6, 7  ;;  %1558 = vmatpush3.msk.msra.mxu1 %vm149_vm0, %v1330_v10 }
   0x6   :  { %1560 = vmatmul.mubr.msk.f32.vlgmr.msra.gmra.mrb[0].mxu1 %vm136_vm1, %v93_v5  ;;  %v104_v15 = vsel %vm100_vm2, %v99_v9, %v96_v8  ;;  %v41_v18 = vadd.s32 8, %v2136_v7  ;;  %v103_v19 = vsel %vm100_vm2, %v96_v8, %v97_v11  ;;  %v340_v20 = vrot.slane %v94_v6, 1  ;;  %v1348_v40 = vld [vmem:[%s2605_s5 + $0x80] sm:$0xff]  ;;  %v1349_v41 = vld [vmem:[%s2605_s5 + $0x88] sm:$0xff]  ;;  %v1350_v43 = vld [vmem:[%s2605_s5 + $0x90] sm:$0xff] }
   0x7   :  { %v2150_v16 = vadd.s32 4294967295, %v48_v12  ;;  %v62_v17 = vand.u32 15, %v42_v13  ;;  %1562 = vmatprep.mubr.msk.f32.mxu1 %vm136_vm1, %v94_v6  ;;  %v43_v21 = vadd.s32 24, %v2136_v7  ;;  %v102_v22 = vsel %vm100_vm2, %v97_v11, %v98_v14  ;;  %v1351_v44 = vld [vmem:[%s2605_s5 + $0x98] sm:$0xff]  ;;  %v1352_v46 = vld [vmem:[%s2605_s5 + $0xa0] sm:$0xff]  ;;  %v1353_v47 = vld [vmem:[%s2605_s5 + $0xa8] sm:$0xff] }
   0x8   :  { %v55_v24 = vand.u32 15, %v41_v18  ;;  %v338_v26 = vrot.slane %v92_v2, 1  ;;  %v339_v27 = vrot.slane %v93_v5, 1  ;;  %vm342_vm5 = vcmp.lt.s32.totalorder %v2136_v7, 7  ;;  %v1354_v49 = vld [vmem:[%s2605_s5 + $0xb0] sm:$0xff]  ;;  %v1355_v50 = vld [vmem:[%s2605_s5 + $0xb8] sm:$0xff] }
   0x9   :  { %vm109_vm3 = vcmp.ge.s32.totalorder %v2150_v16, 0  ;;  %v2160_v23 = vadd.s32 4294967295, %v62_v17  ;;  %v69_v28 = vand.u32 15, %v43_v21  ;;  %v101_v31 = vsel %vm100_vm2, %v98_v14, %v99_v9  ;;  %v1356_v52 = vld [vmem:[%s2605_s5 + $0xc0] sm:$0xff]  ;;  %v1357_v53 = vld [vmem:[%s2605_s5 + $0xc8] sm:$0xff]  ;;  %v1358_v54 = vld [vmem:[%s2605_s5 + $0xd0] sm:$0xff] }
   0xa   :  { %v129_v25 = vsel %vm109_vm3, %v104_v15, 0.0  ;;  %1563 = vmatmul.mubr.msk.f32.gmra.mrb[2].mxu1 %vm136_vm1, %v95_v3  ;;  %v2168_v29 = vadd.s32 1, %v55_v24  ;;  %v341_v32 = vrot.slane %v95_v3, 1  ;;  %v345_v33 = vsel %vm342_vm5, %v338_v26, %v339_v27  ;;  %v1359_v56 = vld [vmem:[%s2605_s5 + $0xd8] sm:$0xff]  ;;  %v1360_v58 = vld [vmem:[%s2605_s5 + $0xe0] sm:$0xff]  ;;  %v1361_v59 = vld [vmem:[%s2605_s5 + $0xe8] sm:$0xff] }
   0xb   :  { %1567 = vmatprep.mubr.msk.f32.mxu0 %vm136_vm1, %v129_v25  ;;  %vm111_vm4 = vcmp.ge.s32.totalorder %v2160_v23, 0  ;;  %v344_v34 = vsel %vm342_vm5, %v339_v27, %v340_v20  ;;  %v2182_v35 = vadd.s32 1, %v69_v28  ;;  %v1809_v42 = vpack.c.bf16 %v1349_v41, %v1348_v40  ;;  %v1362_v61 = vld [vmem:[%s2605_s5 + $0xf0] sm:$0xff]  ;;  %v1363_v62 = vld [vmem:[%s2605_s5 + $0xf8] sm:$0xff]  ;;  %v561_v0 = vld [vmem:[%s2605_s5] sm:$0xff] }
   0xc   :  { %1568 = vmatmul.mubr.msk.f32.vlgmr.msra.gmra.mrb[0].mxu0 %vm136_vm1, %v103_v19  ;;  %v131_v30 = vsel %vm111_vm4, %v102_v22, 0.0  ;;  %vm356_vm6 = vcmp.lt.s32.totalorder %v2168_v29, 16  ;;  %v343_v37 = vsel %vm342_vm5, %v340_v20, %v341_v32  ;;  %v346_v38 = vsel %vm342_vm5, %v341_v32, %v338_v26  ;;  %v562_v1 = vld [vmem:[%s2605_s5 + $0x8] sm:$0xff]  ;;  %v1347_v9 = vld [vmem:[%s2602_s2] ss:$0 sm:$0xff]  ;;  %v973_v16 = vld [vmem:[%s2609_s9 + $0x58] sm:$0xff] }
   0xd   :  { %1574 = vmatpush3.msk.msra.mxu0 %vm149_vm0, %v1341_v4  ;;  %1570 = vmatprep.mubr.msk.f32.mxu0 %vm136_vm1, %v131_v30  ;;  %v372_v36 = vsel %vm356_vm6, %v344_v34, 0.0  ;;  %vm358_vm7 = vcmp.lt.s32.totalorder %v2182_v35, 16  ;;  %v1813_v45 = vpack.c.bf16 %v1351_v44, %v1350_v43  ;;  %v1817_v48 = vpack.c.bf16 %v1353_v47, %v1352_v46  ;;  %v1411_v23 = vld [vmem:[%s2609_s9 + $0x140] sm:$0xff] }
   0xe   :  { %v374_v39 = vsel %vm358_vm7, %v346_v38, 0.0  ;;  %1810 = vmatprep.subr.bf16.mxu1 %v1809_v42  ;;  %v1821_v51 = vpack.c.bf16 %v1355_v50, %v1354_v49  ;;  %v1825_v55 = vpack.c.bf16 %v1357_v53, %v1356_v52  ;;  %v1829_v57 = vpack.c.bf16 %v1359_v56, %v1358_v54  ;;  %v522_v56 = vld [vmem:[%s2603_s3] sm:$0x1] }
   0xf   :  { %1812 = vmatpush3.bf16.msra.mxu1 %v1809_v42  ;;  %v1833_v60 = vpack.c.bf16 %v1361_v59, %v1360_v58  ;;  %v1837_v63 = vpack.c.bf16 %v1363_v62, %v1362_v61  ;;  %v2252_v2 = vpack.c.bf16 %v562_v1, %v561_v0  ;;  %vm1312_vm8 = vcmask 1041409  }
  0x10   :  { %1571 = vmatmul.mubr.msk.f32.gmra.mrb[2].mxu0 %vm136_vm1, %v101_v31  ;;  %1814 = vmatprep.subr.bf16.mxu1 %v1813_v45 }
  0x11   :  { %1575 = vmatprep.mubr.msk.f32.mxu0 %vm136_vm1, %v345_v33 }
  0x13   :  { %1816 = vmatpush3.bf16.msra.mxu1 %v1813_v45 }
  0x14   :  { %1576 = vmatmul.mubr.msk.f32.vlgmr.msra.gmra.mrb[0].mxu0 %vm136_vm1, %v372_v36  ;;  %1818 = vmatprep.subr.bf16.mxu1 %v1817_v48 }
  0x15   :  { %1578 = vmatprep.mubr.msk.f32.mxu0 %vm136_vm1, %v343_v37 }
  0x17   :  { %1820 = vmatpush3.bf16.msra.mxu1 %v1817_v48 }
  0x18   :  { %1579 = vmatmul.mubr.msk.f32.gmra.mrb[2].mxu0 %vm136_vm1, %v374_v39  ;;  %1822 = vmatprep.subr.bf16.mxu1 %v1821_v51 }
  0x1b   :  { %1824 = vmatpush3.bf16.msra.mxu1 %v1821_v51 }
  0x1c   :  { %1826 = vmatprep.subr.bf16.mxu1 %v1825_v55 }
  0x1f   :  { %1828 = vmatpush3.bf16.msra.mxu1 %v1825_v55 }
  0x20   :  { %1830 = vmatprep.subr.bf16.mxu1 %v1829_v57 }
  0x23   :  { %1832 = vmatpush3.bf16.msra.mxu1 %v1829_v57  ;;  %v2262_v57 = vsub.s32 0, %v2136_v7 }
  0x24   :  { %1834 = vmatprep.subr.bf16.mxu1 %v1833_v60 }
  0x27   :  { %1836 = vmatpush3.bf16.msra.mxu1 %v1833_v60  ;;  %v526_v60 = vld [vmem:[%s2604_s4] sm:$0x1] }
  0x28   :  { %1838 = vmatprep.subr.bf16.mxu1 %v1837_v63 }
  0x2b   :  { %1840 = vmatpush3.bf16.msra.mxu1 %v1837_v63 }
  0x2c   :  { %1842 = vmatprep.subr.bf16.mxu1 %v2252_v2 }
  0xd9   :  { %v1561_v3 = vpop.f32.mrb[0].mxu1 }
  0xda   :  { %v219_v4 = vpop.f32.mrb[1].mxu1 }
  0xdd   :  { %v1564_v5 = vpop.f32.mrb[2].mxu1 }
  0xde   :  { %v229_v6 = vpop.f32.mrb[3].mxu1 }
  0xe7   :  { %v1577_v8 = vpop.f32.mrb[0].mxu0 }
  0xe8   :  { %v2001_v10 = vadd.f32 %v1577_v8, %v1561_v3  ;;  %v458_v11 = vpop.f32.mrb[1].mxu0  ;;  %v564_v8 = vld [vmem:[%s2605_s5 + $0x18] sm:$0xff] }
  0xe9   :  { %v2002_v12 = vadd.f32 %v458_v11, %v219_v4 }
  0xea   :  { %v489_v13 = vadd.f32 %v2001_v10, %v1347_v9 }
  0xeb   :  { %v488_v14 = vadd.f32 %v2002_v12, %v1347_v9  ;;  %v1580_v15 = vpop.f32.mrb[2].mxu0 }
  0xec   :  { %v493_v17 = vmax.f32 %v489_v13, 0.0  ;;  %v2003_v18 = vadd.f32 %v1580_v15, %v1564_v5  ;;  %v468_v19 = vpop.f32.mrb[3].mxu0  ;;  %v566_v15 = vld [vmem:[%s2605_s5 + $0x28] sm:$0xff] }
  0xed   :  { %v492_v20 = vmax.f32 %v488_v14, 0.0  ;;  %v2004_v21 = vadd.f32 %v468_v19, %v229_v6  ;;  %v563_v6 = vld [vmem:[%s2605_s5 + $0x10] sm:$0xff]  ;;  %v565_v14 = vld [vmem:[%s2605_s5 + $0x20] sm:$0xff] }
  0xee   :  { %v506_v22 = vmul.f32 %v493_v17, %v493_v17  ;;  %v491_v24 = vadd.f32 %v2003_v18, %v1347_v9  ;;  %v1845_v13 = vpack.c.bf16 %v564_v8, %v563_v6  ;;  %v1378_v8 = vld [vmem:[%s2605_s5 + $0x160] sm:$0xff] }
  0xef   :  { %v496_v25 = vadd.f32 %v493_v17, %v492_v20  ;;  %v505_v26 = vmul.f32 %v492_v20, %v492_v20  ;;  %v490_v27 = vadd.f32 %v2004_v21, %v1347_v9 }
  0xf0   :  { %v495_v30 = vmax.f32 %v491_v24, 0.0 }
  0xf1   :  { %v509_v28 = vadd.f32 %v506_v22, %v505_v26  ;;  %v494_v31 = vmax.f32 %v490_v27, 0.0  ;;  %v1849_v27 = vpack.c.bf16 %v566_v15, %v565_v14  ;;  %v1385_v14 = vld [vmem:[%s2609_s9 + $0x80] sm:$0xff]  ;;  %v1386_v15 = vld [vmem:[%s2609_s9 + $0x88] sm:$0xff] }
  0xf2   :  { %v508_v34 = vmul.f32 %v495_v30, %v495_v30 }
  0xf3   :  { %v497_v32 = vadd.f32 %v496_v25, %v494_v31  ;;  %v507_v33 = vmul.f32 %v494_v31, %v494_v31 }
  0xf5   :  { %v498_v36 = vadd.f32 %v497_v32, %v495_v30  ;;  %v510_v37 = vadd.f32 %v509_v28, %v507_v33  ;;  %v567_v33 = vld [vmem:[%s2605_s5 + $0x30] sm:$0xff] }
  0xf7   :  { %v499_v38 = vrot.slane %v498_v36, 4  ;;  %v511_v39 = vadd.f32 %v510_v37, %v508_v34  ;;  %v568_v34 = vld [vmem:[%s2605_s5 + $0x38] sm:$0xff] }
  0xf9   :  { %v500_v40 = vadd.f32 %v499_v38, %v498_v36  ;;  %v512_v41 = vrot.slane %v511_v39, 4  ;;  %v1853_v38 = vpack.c.bf16 %v568_v34, %v567_v33  ;;  %v1397_v34 = vld [vmem:[%s2609_s9 + $0xe0] sm:$0xff] }
  0xfb   :  { %v501_v42 = vrot.slane %v500_v40, 2  ;;  %v513_v43 = vadd.f32 %v512_v41, %v511_v39  ;;  %v569_v39 = vld [vmem:[%s2605_s5 + $0x40] sm:$0xff] }
  0xfd   :  { %v502_v44 = vadd.f32 %v501_v42, %v500_v40  ;;  %v514_v45 = vrot.slane %v513_v43, 2  ;;  %v570_v40 = vld [vmem:[%s2605_s5 + $0x48] sm:$0xff]  ;;  %v571_v42 = vld [vmem:[%s2605_s5 + $0x50] sm:$0xff] }
  0xfe   :  { %v1857_v41 = vpack.c.bf16 %v570_v40, %v569_v39  ;;  %v1400_v39 = vld [vmem:[%s2609_s9 + $0xf8] sm:$0xff] }
  0xff   :  { %v503_v46 = vrot.slane %v502_v44, 1  ;;  %v515_v47 = vadd.f32 %v514_v45, %v513_v43  ;;  %v572_v43 = vld [vmem:[%s2605_s5 + $0x58] sm:$0xff]  ;;  %v573_v45 = vld [vmem:[%s2605_s5 + $0x60] sm:$0xff] }
 0x101   :  { %v504_v48 = vadd.f32 %v503_v46, %v502_v44  ;;  %v516_v49 = vrot.slane %v515_v47, 1  ;;  %v1861_v44 = vpack.c.bf16 %v572_v43, %v571_v42  ;;  %v574_v46 = vld [vmem:[%s2605_s5 + $0x68] sm:$0xff] }
 0x102   :  { %v963_v42 = vld [vmem:[%s2609_s9 + $0x8] sm:$0xff] }
 0x103   :  { %v517_v50 = vadd.f32 %v516_v49, %v515_v47  ;;  %v518_v51 = vmul.f32 0.03125, %v504_v48  ;;  %v1865_v47 = vpack.c.bf16 %v574_v46, %v573_v45  ;;  %v575_v48 = vld [vmem:[%s2605_s5 + $0x70] sm:$0xff]  ;;  %v576_v49 = vld [vmem:[%s2605_s5 + $0x78] sm:$0xff] }
 0x105   :  { %v519_v52 = vmul.f32 0.03125, %v517_v50  ;;  %v520_v53 = vmul.f32 %v518_v51, %v518_v51  ;;  %v1869_v50 = vpack.c.bf16 %v576_v49, %v575_v48 }
 0x107   :  { %v521_v54 = vsub.f32 %v519_v52, %v520_v53  ;;  %v1367_v52 = vld [vmem:[%s2605_s5 + $0x108] sm:$0xff] }
 0x109   :  { %v523_v55 = vadd.f32 1e-05, %v521_v54  ;;  %v1368_v54 = vld [vmem:[%s2605_s5 + $0x110] sm:$0xff] }
 0x10b   :  { %2026 = vrsqrt.f32 %v523_v55  ;;  %v1369_v55 = vld [vmem:[%s2605_s5 + $0x118] sm:$0xff] }
 0x115   :  { %v2027_v58 = vpop.eup %2026 }
 0x116   :  { %v525_v59 = vmul.f32 %v2027_v58, %v522_v56  ;;  %v1877_v56 = vpack.c.bf16 %v1369_v55, %v1368_v54  ;;  %v1370_v58 = vld [vmem:[%s2605_s5 + $0x120] sm:$0xff] }
 0x118   :  { %v527_v61 = vmul.f32 %v525_v59, %v518_v51  ;;  %v533_v62 = vrot.slane %v525_v59, %v2262_v57  ;;  %v1366_v51 = vld [vmem:[%s2605_s5 + $0x100] sm:$0xff]  ;;  %v1371_v59 = vld [vmem:[%s2605_s5 + $0x128] sm:$0xff] }
 0x119   :  { %v1873_v53 = vpack.c.bf16 %v1367_v52, %v1366_v51 }
 0x11a   :  { %v528_v63 = vsub.f32 %v526_v60, %v527_v61  ;;  %v535_v0 = vmul.f32 %v533_v62, %v492_v20  ;;  %v536_v1 = vmul.f32 %v533_v62, %v493_v17  ;;  %v537_v3 = vmul.f32 %v533_v62, %v494_v31  ;;  %v1372_v61 = vld [vmem:[%s2605_s5 + $0x130] sm:$0xff] }
 0x11b   :  { %v538_v4 = vmul.f32 %v533_v62, %v495_v30  ;;  %v1881_v60 = vpack.c.bf16 %v1371_v59, %v1370_v58  ;;  %v1373_v62 = vld [vmem:[%s2605_s5 + $0x138] sm:$0xff] }
 0x11c   :  { %v543_v5 = vrot.slane %v528_v63, %v2262_v57  ;;  %v1885_v63 = vpack.c.bf16 %v1373_v62, %v1372_v61 }
 0x11e   :  { %v545_v9 = vadd.f32 %v543_v5, %v535_v0  ;;  %v546_v10 = vadd.f32 %v543_v5, %v536_v1  ;;  %v547_v11 = vadd.f32 %v543_v5, %v537_v3  ;;  %v548_v12 = vadd.f32 %v543_v5, %v538_v4  ;;  %v1374_v0 = vld [vmem:[%s2605_s5 + $0x140] sm:$0xff]  ;;  %v1375_v1 = vld [vmem:[%s2605_s5 + $0x148] sm:$0xff]  ;;  %v1376_v4 = vld [vmem:[%s2605_s5 + $0x150] sm:$0xff] }
 0x11f   :  { %v1889_v3 = vpack.c.bf16 %v1375_v1, %v1374_v0  ;;  %v1377_v5 = vld [vmem:[%s2605_s5 + $0x158] sm:$0xff] }
 0x120   :  { %1613 = vmatprep.mubr.f32.mxu1 %v545_v9  ;;  %v766_v17 = vrot.slane %v547_v11, 1  ;;  %v549_v18 = vrot.slane %v545_v9, 7  ;;  %v552_v19 = vrot.slane %v548_v12, 7  ;;  %v550_v20 = vrot.slane %v546_v10, 7 }
 0x121   :  { %1614 = vmatmul.mubr.f32.vlgmr.msra.gmra.mrb[4].mxu1 %v546_v10  ;;  %v551_v21 = vrot.slane %v547_v11, 7  ;;  %v764_v22 = vrot.slane %v545_v9, 1  ;;  %v765_v24 = vrot.slane %v546_v10, 1  ;;  %v767_v25 = vrot.slane %v548_v12, 1  ;;  %v1379_v9 = vld [vmem:[%s2605_s5 + $0x168] sm:$0xff] }
 0x122   :  { %1844 = vmatpush3.bf16.msra.mxu1 %v2252_v2  ;;  %1616 = vmatprep.mubr.f32.mxu1 %v547_v11  ;;  %v556_v26 = vsel %vm100_vm2, %v552_v19, %v549_v18  ;;  %v555_v28 = vsel %vm100_vm2, %v549_v18, %v550_v20  ;;  %v1893_v6 = vpack.c.bf16 %v1377_v5, %v1376_v4  ;;  %v1380_v11 = vld [vmem:[%s2605_s5 + $0x170] sm:$0xff] }
 0x123   :  { %1846 = vmatprep.subr.bf16.mxu1 %v1845_v13  ;;  %v554_v30 = vsel %vm100_vm2, %v550_v20, %v551_v21  ;;  %v553_v31 = vsel %vm100_vm2, %v551_v21, %v552_v19  ;;  %v770_v32 = vsel %vm342_vm5, %v764_v22, %v765_v24  ;;  %v2294_v2 = vsel %vm342_vm5, %v765_v24, %v766_v17  ;;  %v1387_v18 = vld [vmem:[%s2609_s9 + $0x90] sm:$0xff]  ;;  %v1388_v19 = vld [vmem:[%s2609_s9 + $0x98] sm:$0xff]  ;;  %v1389_v21 = vld [vmem:[%s2609_s9 + $0xa0] sm:$0xff] }
 0x124   :  { %v2304_v36 = vsel %vm342_vm5, %v766_v17, %v767_v25  ;;  %v2308_v37 = vsel %vm342_vm5, %v767_v25, %v764_v22  ;;  %v1897_v10 = vpack.c.bf16 %v1379_v9, %v1378_v8  ;;  %v1905_v17 = vpack.c.bf16 %v1386_v15, %v1385_v14  ;;  %v1390_v22 = vld [vmem:[%s2609_s9 + $0xa8] sm:$0xff]  ;;  %v1391_v25 = vld [vmem:[%s2609_s9 + $0xb0] sm:$0xff] }
 0x125   :  { %1617 = vmatmul.mubr.f32.gmra.mrb[6].mxu1 %v548_v12  ;;  %v1381_v12 = vld [vmem:[%s2605_s5 + $0x178] sm:$0xff]  ;;  %v1909_v20 = vpack.c.bf16 %v1388_v19, %v1387_v18  ;;  %v1913_v24 = vpack.c.bf16 %v1390_v22, %v1389_v21 }
 0x126   :  { %1848 = vmatpush3.bf16.msra.mxu1 %v1845_v13  ;;  %1651 = vmatprep.mubr.msk.f32.mxu1 %vm109_vm3, %v556_v26  ;;  %v1901_v13 = vpack.c.bf16 %v1381_v12, %v1380_v11  ;;  %v1392_v26 = vld [vmem:[%s2609_s9 + $0xb8] sm:$0xff] }
 0x127   :  { %1850 = vmatprep.subr.bf16.mxu1 %v1849_v27  ;;  %1906 = vmatprep.subr.bf16.mxu0 %v1905_v17 }
 0x128   :  { %1908 = vmatpush3.bf16.msra.mxu0 %v1905_v17 }
 0x129   :  { %1910 = vmatprep.subr.bf16.mxu0 %v1909_v20 }
 0x12a   :  { %1852 = vmatpush3.bf16.msra.mxu1 %v1849_v27  ;;  %v1917_v27 = vpack.c.bf16 %v1392_v26, %v1391_v25  ;;  %v923_v25 = vld [vmem:[%s2607_s7] sm:$0x1] }
 0x12b   :  { %1854 = vmatprep.subr.bf16.mxu1 %v1853_v38 }
 0x12c   :  { %1912 = vmatpush3.bf16.msra.mxu0 %v1909_v20 }
 0x12d   :  { %1914 = vmatprep.subr.bf16.mxu0 %v1913_v24 }
 0x12e   :  { %1856 = vmatpush3.bf16.msra.mxu1 %v1853_v38  ;;  %v1399_v38 = vld [vmem:[%s2609_s9 + $0xf0] sm:$0xff] }
 0x12f   :  { %1858 = vmatprep.subr.bf16.mxu1 %v1857_v41  ;;  %v1933_v40 = vpack.c.bf16 %v1400_v39, %v1399_v38  ;;  %v964_v38 = vld [vmem:[%s2609_s9 + $0x10] sm:$0xff]  ;;  %v965_v39 = vld [vmem:[%s2609_s9 + $0x18] sm:$0xff] }
 0x130   :  { %1916 = vmatpush3.bf16.msra.mxu0 %v1913_v24 }
 0x131   :  { %1918 = vmatprep.subr.bf16.mxu0 %v1917_v27 }
 0x132   :  { %1860 = vmatpush3.bf16.msra.mxu1 %v1857_v41  ;;  %v962_v41 = vld [vmem:[%s2609_s9] sm:$0xff] }
 0x133   :  { %1862 = vmatprep.subr.bf16.mxu1 %v1861_v44  ;;  %v2447_v43 = vpack.c.bf16 %v963_v42, %v962_v41 }
 0x134   :  { %1920 = vmatpush3.bf16.msra.mxu0 %v1917_v27 }
 0x136   :  { %1864 = vmatpush3.bf16.msra.mxu1 %v1861_v44  ;;  %v1384_v44 = vld [vmem:[%s2606_s6] ss:$0 sm:$0xff] }
 0x137   :  { %1866 = vmatprep.subr.bf16.mxu1 %v1865_v47 }
 0x13a   :  { %1868 = vmatpush3.bf16.msra.mxu1 %v1865_v47 }
 0x13b   :  { %1870 = vmatprep.subr.bf16.mxu1 %v1869_v50 }
 0x13e   :  { %1872 = vmatpush3.bf16.msra.mxu1 %v1869_v50 }
 0x13f   :  { %1874 = vmatprep.subr.bf16.mxu1 %v1873_v53 }
 0x141   :  { %1652 = vmatmul.mubr.f32.vlgmr.msra.gmra.mrb[4].mxu1 %v555_v28  ;;  %v1393_v28 = vld [vmem:[%s2609_s9 + $0xc0] sm:$0xff] }
 0x142   :  { %1654 = vmatprep.mubr.msk.f32.mxu1 %vm111_vm4, %v554_v30  ;;  %1876 = vmatpush3.bf16.msra.mxu1 %v1873_v53  ;;  %v1394_v30 = vld [vmem:[%s2609_s9 + $0xc8] sm:$0xff] }
 0x143   :  { %1878 = vmatprep.subr.bf16.mxu1 %v1877_v56 }
 0x145   :  { %1655 = vmatmul.mubr.f32.gmra.mrb[6].mxu1 %v553_v31  ;;  %v1921_v31 = vpack.c.bf16 %v1394_v30, %v1393_v28  ;;  %v927_v28 = vld [vmem:[%s2608_s8] sm:$0x1] }
 0x146   :  { %1880 = vmatpush3.bf16.msra.mxu1 %v1877_v56  ;;  %1689 = vmatprep.mubr.f32.mxu1 %v770_v32  ;;  %v1395_v32 = vld [vmem:[%s2609_s9 + $0xd0] sm:$0xff] }
 0x147   :  { %1882 = vmatprep.subr.bf16.mxu1 %v1881_v60  ;;  %1922 = vmatprep.subr.bf16.mxu0 %v1921_v31 }
 0x148   :  { %1924 = vmatpush3.bf16.msra.mxu0 %v1921_v31 }
 0x14a   :  { %1884 = vmatpush3.bf16.msra.mxu1 %v1881_v60 }
 0x14b   :  { %1886 = vmatprep.subr.bf16.mxu1 %v1885_v63 }
 0x14e   :  { %1888 = vmatpush3.bf16.msra.mxu1 %v1885_v63 }
 0x14f   :  { %1890 = vmatprep.subr.bf16.mxu1 %v1889_v3 }
 0x152   :  { %1892 = vmatpush3.bf16.msra.mxu1 %v1889_v3 }
 0x153   :  { %1894 = vmatprep.subr.bf16.mxu1 %v1893_v6 }
 0x156   :  { %1896 = vmatpush3.bf16.msra.mxu1 %v1893_v6 }
 0x157   :  { %1898 = vmatprep.subr.bf16.mxu1 %v1897_v10 }
 0x15a   :  { %1900 = vmatpush3.bf16.msra.mxu1 %v1897_v10 }
 0x15b   :  { %1902 = vmatprep.subr.bf16.mxu1 %v1901_v13 }
 0x15e   :  { %1904 = vmatpush3.bf16.msra.mxu1 %v1901_v13 }
 0x161   :  { %1690 = vmatmul.mubr.msk.f32.vlgmr.msra.gmra.mrb[4].mxu1 %vm356_vm6, %v2294_v2  ;;  %v1396_v2 = vld [vmem:[%s2609_s9 + $0xd8] sm:$0xff] }
 0x162   :  { %1692 = vmatprep.mubr.f32.mxu1 %v2304_v36  ;;  %v1925_v33 = vpack.c.bf16 %v1396_v2, %v1395_v32  ;;  %v1398_v36 = vld [vmem:[%s2609_s9 + $0xe8] sm:$0xff] }
 0x164   :  { %1926 = vmatprep.subr.bf16.mxu0 %v1925_v33 }
 0x165   :  { %1693 = vmatmul.mubr.msk.f32.gmra.mrb[6].mxu1 %vm358_vm7, %v2308_v37  ;;  %1928 = vmatpush3.bf16.msra.mxu0 %v1925_v33  ;;  %v1929_v37 = vpack.c.bf16 %v1398_v36, %v1397_v34 }
 0x167   :  { %1930 = vmatprep.subr.bf16.mxu0 %v1929_v37 }
 0x169   :  { %1932 = vmatpush3.bf16.msra.mxu0 %v1929_v37 }
 0x16a   :  { %1934 = vmatprep.subr.bf16.mxu0 %v1933_v40 }
 0x16d   :  { %1936 = vmatpush3.bf16.msra.mxu0 %v1933_v40 }
 0x16e   :  { %1938 = vmatprep.subr.bf16.mxu0 %v2447_v43 }
 0x234   :  { %v1691_v45 = vpop.f32.mrb[4].mxu1 }
 0x235   :  { %v890_v46 = vadd.f32 %v1691_v45, %v1384_v44  ;;  %v859_v47 = vpop.f32.mrb[5].mxu1  ;;  %v1941_v45 = vpack.c.bf16 %v965_v39, %v964_v38  ;;  %v1417_v38 = vld [vmem:[%s2609_s9 + $0x170] sm:$0xff]  ;;  %v1418_v39 = vld [vmem:[%s2609_s9 + $0x178] sm:$0xff] }
 0x236   :  { %v889_v48 = vadd.f32 %v1384_v44, %v859_v47 }
 0x237   :  { %v894_v49 = vmax.f32 %v890_v46, 0.0  ;;  %v966_v46 = vld [vmem:[%s2609_s9 + $0x20] sm:$0xff] }
 0x238   :  { %v893_v50 = vmax.f32 %v889_v48, 0.0  ;;  %v1694_v51 = vpop.f32.mrb[6].mxu1 }
 0x239   :  { %v907_v52 = vmul.f32 %v894_v49, %v894_v49  ;;  %v892_v53 = vadd.f32 %v1694_v51, %v1384_v44  ;;  %v869_v54 = vpop.f32.mrb[7].mxu1 }
 0x23a   :  { %v897_v55 = vadd.f32 %v894_v49, %v893_v50  ;;  %v906_v56 = vmul.f32 %v893_v50, %v893_v50  ;;  %v891_v58 = vadd.f32 %v1384_v44, %v869_v54 }
 0x23b   :  { %v896_v60 = vmax.f32 %v892_v53, 0.0 }
 0x23c   :  { %v910_v59 = vadd.f32 %v907_v52, %v906_v56  ;;  %v895_v61 = vmax.f32 %v891_v58, 0.0 }
 0x23d   :  { %v909_v0 = vmul.f32 %v896_v60, %v896_v60 }
 0x23e   :  { %v898_v62 = vadd.f32 %v897_v55, %v895_v61  ;;  %v908_v63 = vmul.f32 %v895_v61, %v895_v61 }
 0x240   :  { %v899_v1 = vadd.f32 %v898_v62, %v896_v60  ;;  %v911_v3 = vadd.f32 %v910_v59, %v908_v63  ;;  %v968_v62 = vld [vmem:[%s2609_s9 + $0x30] sm:$0xff]  ;;  %v969_v63 = vld [vmem:[%s2609_s9 + $0x38] sm:$0xff] }
 0x242   :  { %v900_v4 = vrot.slane %v899_v1, 4  ;;  %v912_v5 = vadd.f32 %v911_v3, %v909_v0  ;;  %v1949_v3 = vpack.c.bf16 %v969_v63, %v968_v62 }
 0x244   :  { %v901_v6 = vadd.f32 %v900_v4, %v899_v1  ;;  %v913_v8 = vrot.slane %v912_v5, 4  ;;  %v970_v4 = vld [vmem:[%s2609_s9 + $0x40] sm:$0xff] }
 0x246   :  { %v902_v9 = vrot.slane %v901_v6, 2  ;;  %v914_v10 = vadd.f32 %v913_v8, %v912_v5  ;;  %v971_v5 = vld [vmem:[%s2609_s9 + $0x48] sm:$0xff] }
 0x247   :  { %v1953_v7 = vpack.c.bf16 %v971_v5, %v970_v4 }
 0x248   :  { %v903_v11 = vadd.f32 %v902_v9, %v901_v6  ;;  %v915_v12 = vrot.slane %v914_v10, 2  ;;  %v972_v6 = vld [vmem:[%s2609_s9 + $0x50] sm:$0xff]  ;;  %v974_v9 = vld [vmem:[%s2609_s9 + $0x60] sm:$0xff] }
 0x249   :  { %v1957_v8 = vpack.c.bf16 %v973_v16, %v972_v6 }
 0x24a   :  { %v904_v13 = vrot.slane %v903_v11, 1  ;;  %v916_v14 = vadd.f32 %v915_v12, %v914_v10  ;;  %v975_v10 = vld [vmem:[%s2609_s9 + $0x68] sm:$0xff]  ;;  %v976_v12 = vld [vmem:[%s2609_s9 + $0x70] sm:$0xff] }
 0x24c   :  { %v905_v15 = vadd.f32 %v904_v13, %v903_v11  ;;  %v917_v17 = vrot.slane %v916_v14, 1  ;;  %v1961_v11 = vpack.c.bf16 %v975_v10, %v974_v9  ;;  %v977_v13 = vld [vmem:[%s2609_s9 + $0x78] sm:$0xff] }
 0x24e   :  { %v918_v18 = vadd.f32 %v917_v17, %v916_v14  ;;  %v919_v19 = vmul.f32 0.03125, %v905_v15  ;;  %v1965_v14 = vpack.c.bf16 %v977_v13, %v976_v12  ;;  %v1403_v15 = vld [vmem:[%s2609_s9 + $0x100] sm:$0xff]  ;;  %v1404_v17 = vld [vmem:[%s2609_s9 + $0x108] sm:$0xff] }
 0x250   :  { %v920_v20 = vmul.f32 0.03125, %v918_v18  ;;  %v921_v21 = vmul.f32 %v919_v19, %v919_v19  ;;  %v1969_v18 = vpack.c.bf16 %v1404_v17, %v1403_v15 }
 0x252   :  { %v922_v22 = vsub.f32 %v920_v20, %v921_v21  ;;  %v1406_v20 = vld [vmem:[%s2609_s9 + $0x118] sm:$0xff] }
 0x254   :  { %v924_v24 = vadd.f32 1e-05, %v922_v22  ;;  %v1407_v22 = vld [vmem:[%s2609_s9 + $0x120] sm:$0xff] }
 0x256   :  { %2028 = vrsqrt.f32 %v924_v24  ;;  %v1408_v24 = vld [vmem:[%s2609_s9 + $0x128] sm:$0xff] }
 0x260   :  { %v2029_v26 = vpop.eup %2028 }
 0x261   :  { %v926_v27 = vmul.f32 %v2029_v26, %v923_v25  ;;  %v1977_v25 = vpack.c.bf16 %v1408_v24, %v1407_v22  ;;  %v1409_v26 = vld [vmem:[%s2609_s9 + $0x130] sm:$0xff] }
 0x263   :  { %v934_v30 = vrot.slane %v926_v27, %v2262_v57  ;;  %v928_v31 = vmul.f32 %v926_v27, %v919_v19  ;;  %v1405_v19 = vld [vmem:[%s2609_s9 + $0x110] sm:$0xff]  ;;  %v1410_v27 = vld [vmem:[%s2609_s9 + $0x138] sm:$0xff] }
 0x264   :  { %v1973_v21 = vpack.c.bf16 %v1406_v20, %v1405_v19 }
 0x265   :  { %v938_v32 = vmul.f32 %v934_v30, %v895_v61  ;;  %v929_v2 = vsub.f32 %v927_v28, %v928_v31  ;;  %v936_v33 = vmul.f32 %v934_v30, %v893_v50  ;;  %v937_v34 = vmul.f32 %v934_v30, %v894_v49 }
 0x266   :  { %v939_v36 = vmul.f32 %v934_v30, %v896_v60  ;;  %v1981_v28 = vpack.c.bf16 %v1410_v27, %v1409_v26  ;;  %v1412_v30 = vld [vmem:[%s2609_s9 + $0x148] sm:$0xff] }
 0x267   :  { %v944_v37 = vrot.slane %v929_v2, %v2262_v57  ;;  %v967_v57 = vld [vmem:[%s2609_s9 + $0x28] sm:$0xff]  ;;  %v1985_v31 = vpack.c.bf16 %v1412_v30, %v1411_v23  ;;  %v1414_v2 = vld [vmem:[%s2609_s9 + $0x158] sm:$0xff] }
 0x268   :  { %v1945_v56 = vpack.c.bf16 %v967_v57, %v966_v46 }
 0x269   :  { %v946_v40 = vadd.f32 %v944_v37, %v936_v33  ;;  %v947_v41 = vadd.f32 %v944_v37, %v937_v34  ;;  %v948_v42 = vadd.f32 %v944_v37, %v938_v32  ;;  %v949_v44 = vadd.f32 %v944_v37, %v939_v36  ;;  %v1413_v32 = vld [vmem:[%s2609_s9 + $0x150] sm:$0xff]  ;;  %v1415_v34 = vld [vmem:[%s2609_s9 + $0x160] sm:$0xff]  ;;  %v1416_v36 = vld [vmem:[%s2609_s9 + $0x168] sm:$0xff]  ;;  %s2054_s9 = smov [#allocation2]  }
 0x26a   :  { %v1989_v33 = vpack.c.bf16 %v1414_v2, %v1413_v32  ;;  %v1993_v37 = vpack.c.bf16 %v1416_v36, %v1415_v34 }
 0x26b   :  { %1727 = vmatprep.mubr.f32.mxu0 %v946_v40  ;;  %v1167_v47 = vrot.slane %v948_v42, 1  ;;  %v950_v48 = vrot.slane %v946_v40, 7  ;;  %v953_v49 = vrot.slane %v949_v44, 7  ;;  %v951_v50 = vrot.slane %v947_v41, 7 }
 0x26c   :  { %1728 = vmatmul.mubr.f32.vlgmr.msra.gmra.mrb[4].mxu0 %v947_v41  ;;  %v952_v51 = vrot.slane %v948_v42, 7  ;;  %v1165_v52 = vrot.slane %v946_v40, 1  ;;  %v1166_v53 = vrot.slane %v947_v41, 1  ;;  %v1168_v54 = vrot.slane %v949_v44, 1  ;;  %v1421_v41 = vld [vmem:[%s2610_s10] ss:$0 sm:$0xff] }
 0x26d   :  { %1940 = vmatpush3.bf16.msra.mxu0 %v2447_v43  ;;  %1730 = vmatprep.mubr.f32.mxu0 %v948_v42  ;;  %v957_v55 = vsel %vm100_vm2, %v953_v49, %v950_v48  ;;  %v956_v58 = vsel %vm100_vm2, %v950_v48, %v951_v50  ;;  %v1997_v40 = vpack.c.bf16 %v1418_v39, %v1417_v38  ;;  %s1322_s10 = sshll.u32 %s2054_s9, 4  ;;  %s1323_s10 = int_to_ptr.vmem [resolvable:$true] %s1322_s10 }
 0x26e   :  { %1942 = vmatprep.subr.bf16.mxu0 %v1941_v45  ;;  %v955_v59 = vsel %vm100_vm2, %v951_v50, %v952_v51  ;;  %v954_v60 = vsel %vm100_vm2, %v952_v51, %v953_v49  ;;  %v1171_v61 = vsel %vm342_vm5, %v1165_v52, %v1166_v53  ;;  %v2486_v43 = vsel %vm342_vm5, %v1166_v53, %v1167_v47  ;;  %s2030_s14 = scalar_lea.vmem %s1323_s10, 32  ;;  %p2035_p1 = scmp.lt.s32.totalorder %s1323_s10, %s1323_s10 }
 0x26f   :  { %v2496_v0 = vsel %vm342_vm5, %v1167_v47, %v1168_v54  ;;  %v2500_v1 = vsel %vm342_vm5, %v1168_v54, %v1165_v52  ;;  %p2031_p0 = scmp.ne.s32.totalorder %s1323_s10, %s2030_s14  ;;  %p2036_p2 = scmp.lt.s32.totalorder %s2030_s14, %s2030_s14 }
 0x270   :  { %1731 = vmatmul.mubr.f32.gmra.mrb[6].mxu0 %v949_v44 }
 0x271   :  { %1944 = vmatpush3.bf16.msra.mxu0 %v1941_v45  ;;  %1765 = vmatprep.mubr.msk.f32.mxu0 %vm109_vm3, %v957_v55  ;;  %p2037_p3 = por %p2036_p2, %p2035_p1 }
 0x272   :  { %1946 = vmatprep.subr.bf16.mxu0 %v1945_v56 }
 0x273   :  { %p2038_p4 = pnand %p2037_p3, %p2031_p0 }
 0x275   :  { %1948 = vmatpush3.bf16.msra.mxu0 %v1945_v56 }
 0x276   :  { %1950 = vmatprep.subr.bf16.mxu0 %v1949_v3 }
 0x279   :  { %1952 = vmatpush3.bf16.msra.mxu0 %v1949_v3 }
 0x27a   :  { %1954 = vmatprep.subr.bf16.mxu0 %v1953_v7 }
 0x27d   :  { %1956 = vmatpush3.bf16.msra.mxu0 %v1953_v7 }
 0x27e   :  { %1958 = vmatprep.subr.bf16.mxu0 %v1957_v8 }
 0x281   :  { %1960 = vmatpush3.bf16.msra.mxu0 %v1957_v8 }
 0x282   :  { %1962 = vmatprep.subr.bf16.mxu0 %v1961_v11 }
 0x285   :  { %1964 = vmatpush3.bf16.msra.mxu0 %v1961_v11 }
 0x286   :  { %1966 = vmatprep.subr.bf16.mxu0 %v1965_v14 }
 0x289   :  { %1968 = vmatpush3.bf16.msra.mxu0 %v1965_v14 }
 0x28a   :  { %1970 = vmatprep.subr.bf16.mxu0 %v1969_v18 }
 0x28c   :  { %1766 = vmatmul.mubr.f32.vlgmr.msra.gmra.mrb[4].mxu0 %v956_v58 }
 0x28d   :  { %1768 = vmatprep.mubr.msk.f32.mxu0 %vm111_vm4, %v955_v59  ;;  %1972 = vmatpush3.bf16.msra.mxu0 %v1969_v18 }
 0x28e   :  { %1974 = vmatprep.subr.bf16.mxu0 %v1973_v21 }
 0x290   :  { %1769 = vmatmul.mubr.f32.gmra.mrb[6].mxu0 %v954_v60 }
 0x291   :  { %1976 = vmatpush3.bf16.msra.mxu0 %v1973_v21  ;;  %1803 = vmatprep.mubr.f32.mxu0 %v1171_v61 }
 0x292   :  { %1978 = vmatprep.subr.bf16.mxu0 %v1977_v25 }
 0x295   :  { %1980 = vmatpush3.bf16.msra.mxu0 %v1977_v25 }
 0x296   :  { %1982 = vmatprep.subr.bf16.mxu0 %v1981_v28 }
 0x299   :  { %1984 = vmatpush3.bf16.msra.mxu0 %v1981_v28 }
 0x29a   :  { %1986 = vmatprep.subr.bf16.mxu0 %v1985_v31 }
 0x29d   :  { %1988 = vmatpush3.bf16.msra.mxu0 %v1985_v31 }
 0x29e   :  { %1990 = vmatprep.subr.bf16.mxu0 %v1989_v33 }
 0x2a1   :  { %1992 = vmatpush3.bf16.msra.mxu0 %v1989_v33 }
 0x2a2   :  { %1994 = vmatprep.subr.bf16.mxu0 %v1993_v37 }
 0x2a5   :  { %1996 = vmatpush3.bf16.msra.mxu0 %v1993_v37 }
 0x2a6   :  { %1998 = vmatprep.subr.bf16.mxu0 %v1997_v40 }
 0x2a9   :  { %2000 = vmatpush3.bf16.msra.mxu0 %v1997_v40 }
 0x2ac   :  { %1804 = vmatmul.mubr.msk.f32.vlgmr.msra.gmra.mrb[4].mxu0 %vm356_vm6, %v2486_v43 }
 0x2ad   :  { %1806 = vmatprep.mubr.f32.mxu0 %v2496_v0 }
 0x2b0   :  { %1807 = vmatmul.mubr.msk.f32.gmra.mrb[6].mxu0 %vm358_vm7, %v2500_v1 }
 0x37f   :  { %v1805_v42 = vpop.f32.mrb[4].mxu0 }
 0x380   :  { %v1291_v44 = vadd.f32 %v1805_v42, %v1421_v41  ;;  %v1260_v45 = vpop.f32.mrb[5].mxu0 }
 0x381   :  { %v1290_v46 = vadd.f32 %v1421_v41, %v1260_v45 }
 0x383   :  { %v1294_v57 = vadd.f32 %v1291_v44, %v1290_v46  ;;  %v1808_v47 = vpop.f32.mrb[6].mxu0 }
 0x384   :  { %v1293_v48 = vadd.f32 %v1808_v47, %v1421_v41  ;;  %v1270_v49 = vpop.f32.mrb[7].mxu0 }
 0x385   :  { %v1295_v29 = vrot.slane %v1294_v57, 4  ;;  %v1292_v50 = vadd.f32 %v1421_v41, %v1270_v49 }
 0x387   :  { %v1296_v51 = vadd.f32 %v1295_v29, %v1294_v57  ;;  %v1301_v52 = vadd.f32 %v1293_v48, %v1292_v50 }
 0x389   :  { %v1297_v53 = vrot.slane %v1296_v51, 2  ;;  %v1302_v54 = vrot.slane %v1301_v52, 4 }
 0x38b   :  { %v1298_v35 = vadd.f32 %v1297_v53, %v1296_v51  ;;  %v1303_v55 = vadd.f32 %v1302_v54, %v1301_v52 }
 0x38d   :  { %v1299_v56 = vrot.slane %v1298_v35, 1  ;;  %v1304_v58 = vrot.slane %v1303_v55, 2 }
 0x38f   :  { %v1305_v59 = vadd.f32 %v1304_v58, %v1303_v55  ;;  %v1300_v61 = vadd.f32 %v1299_v56, %v1298_v35 }
 0x391   :  { %v1306_v60 = vrot.slane %v1305_v59, 1  ;;  %v1308_v62 = vmul.f32 0.0625, %v1300_v61 }
 0x393   :  { %v1307_v43 = vadd.f32 %v1306_v60, %v1305_v59 }
 0x395   :  { %v1309_v63 = vmul.f32 0.0625, %v1307_v43 }
 0x397   :  { %v1313_v0 = vsel %vm1312_vm8, %v1309_v63, %v1308_v62 }
 0x398   :  { %1315 = vst [vmem:[#allocation2] sm:$0x3] %v1313_v0 }
 0x399   :  { %2041 = shalt.err (!%p2038_p4)
}
 0x39a   :  { %s2042_s17 = scalar_lea.hbm %s2611_s11, 32 }
 0x39b   :  { %p2043_p5 = scmp.ne.s32.totalorder %s2611_s11, %s2042_s17  ;;  %p2046_p6 = scmp.lt.u32.totalorder %s2042_s17, %s2611_s11 }
 0x39d   :  { %p2048_p7 = pnand %p2046_p6, %p2043_p5 }
 0x39f   :  { %2051 = shalt.err (!%p2048_p7)
}
 0x3a0   :  { %1325 = dma.vmem_to_hbm [thread:$0]  %s1323_s10, 32, %s2611_s11, [#allocation3]  }
 0x3a1   :  { %2052 = dma.done.wait [#allocation3], 32  }
 0x3a2   :  { %2053 = vsyncadd [#allocation3], 4294967264 }
 0x3a3   :  { %1329 = vsyncpa [#allocation3], 1 }

</bundles_post_ra>
